<compile_context>
chip_gen: v6e
topology: v6e:2x2x1
jax: 0.10.0
libtpu: 0.0.40
codegen_flags: <defaults>
</compile_context>

<pallas_src>
import functools

import jax
import jax.numpy as jnp
from jax import lax
from jax.experimental import pallas as pl
from jax.experimental.pallas import tpu as pltpu

EPS = 1e-5
MXU_DTYPE = jnp.bfloat16            # MXU operand dtype (accumulation stays f32)
VMEM_LIMIT_BYTES = 32 * 1024 * 1024


# ------------------------- Pallas kernels ------------------------- #

def _conv_stats_kernel(p_ref, w_ref, y_ref, sum_ref, sq_ref):
    # p_ref: (TM, K*K*Cin) bf16   w_ref: (K*K*Cin, Cout) bf16
    # y_ref: (TM, Cout) f32       sum_ref / sq_ref: (1, 1, Cout) per-tile partials
    y = jnp.dot(p_ref[...], w_ref[...], preferred_element_type=jnp.float32)
    y_ref[...] = y
    sum_ref[...] = jnp.sum(y, axis=0, keepdims=True)[None]
    sq_ref[...] = jnp.sum(y * y, axis=0, keepdims=True)[None]


def _stats_kernel(x_ref, sum_ref, sq_ref):
    # Per-channel partial sums for the identity-shortcut BN (no conv).
    x = x_ref[...].astype(jnp.float32)
    sum_ref[...] = jnp.sum(x, axis=0, keepdims=True)[None]
    sq_ref[...] = jnp.sum(x * x, axis=0, keepdims=True)[None]


def _scale_shift_relu_kernel(y_ref, s_ref, b_ref, o_ref):
    # Lane-dense elementwise: y * scale + shift, ReLU, cast (bf16 out for MXU).
    y = y_ref[...] * s_ref[...] + b_ref[...]
    o_ref[...] = jnp.maximum(y, 0.0).astype(o_ref.dtype)


def _bn_add_bn_relu_kernel(y_ref, s1_ref, b1_ref, r_ref, s2_ref, b2_ref, o_ref):
    # Fused bn2(main) + bn_s(shortcut) + add + relu, lane-dense.
    main = y_ref[...] * s1_ref[...] + b1_ref[...]
    short = r_ref[...] * s2_ref[...] + b2_ref[...]
    o_ref[...] = jnp.maximum(main + short, 0.0)


# ------------------------- helpers ------------------------- #

def _pick_tile(n, target):
    """Largest multiple-of-8 divisor of n that is <= target (else n itself)."""
    if n <= target:
        return n
    t = (target // 8) * 8
    while t >= 8:
        if n % t == 0:
            return t
        t -= 8
    return n


def _cparams():
    return pltpu.CompilerParams(
        dimension_semantics=("parallel",),      # M-tiles are independent (megacore on v7x)
        vmem_limit_bytes=VMEM_LIMIT_BYTES,
    )


def _im2col(x_nhwc, K, stride, padding):
    """Gather K*K taps contiguously along the contraction axis.

    Returns (patches (N*Ho*Wo, K*K*C), (Ho, Wo)).  Host/XLA glue - see
    TODO(synk) in the header about moving the tap gather into the kernel.
    For K == 1 this is a plain strided subsample (no duplication).
    """
    N, H, W, C = x_nhwc.shape
    if padding:
        x_nhwc = jnp.pad(
            x_nhwc, ((0, 0), (padding, padding), (padding, padding), (0, 0)))
    Ho = (H + 2 * padding - K) // stride + 1
    Wo = (W + 2 * padding - K) // stride + 1
    M = N * Ho * Wo
    cols = []
    for kh in range(K):
        for kw in range(K):
            sl = lax.slice(
                x_nhwc,
                (0, kh, kw, 0),
                (N, kh + (Ho - 1) * stride + 1, kw + (Wo - 1) * stride + 1, C),
                (1, stride, stride, 1),
            )
            cols.append(sl.reshape(M, C))
    if len(cols) == 1:
        return cols[0], (Ho, Wo)
    return jnp.concatenate(cols, axis=-1), (Ho, Wo)


def _bn_scale_shift(ssum, ssq, m, gamma, beta):
    # Training-mode BN (batch stats, biased variance) as per-channel affine.
    # NOTE: E[x^2]-E[x]^2 in f32 is fine at these magnitudes.
    # TODO(synk): switch to per-tile Welford/centered accumulation at scale.
    mean = ssum / m
    var = jnp.maximum(ssq / m - mean * mean, 0.0)
    scale = gamma / jnp.sqrt(var + EPS)
    shift = beta - mean * scale
    return scale, shift


def _lane_dense(arrs, C):
    """Reshape (M, C) arrays to lane-dense (M*C/128, 128) views when possible."""
    M = arrs[0].shape[0]
    if (M * C) % 128 == 0 and 128 % C == 0:
        reps = 128 // C
        return [a.reshape((M * C) // 128, 128) for a in arrs], reps
    return list(arrs), 1


def _tile_chan(v, reps):
    return jnp.tile(v.astype(jnp.float32), reps).reshape(1, -1)


# ------------------------- Pallas wrappers ------------------------- #

def conv_bn_stats_pallas(patches, w2d, tile_m):
    """Single wide-contraction matmul per M-tile with fused per-tile BN partials."""
    M, KC = patches.shape
    Cout = w2d.shape[1]
    tm = _pick_tile(M, tile_m)
    nt = M // tm
    y, ps, pq = pl.pallas_call(
        _conv_stats_kernel,
        out_shape=(
            jax.ShapeDtypeStruct((M, Cout), jnp.float32),
            jax.ShapeDtypeStruct((nt, 1, Cout), jnp.float32),
            jax.ShapeDtypeStruct((nt, 1, Cout), jnp.float32),
        ),
        grid=(nt,),
        in_specs=[
            pl.BlockSpec((tm, KC), lambda i: (i, 0)),
            pl.BlockSpec((KC, Cout), lambda i: (0, 0)),   # weights fetched once
        ],
        out_specs=(
            pl.BlockSpec((tm, Cout), lambda i: (i, 0)),
            pl.BlockSpec((1, 1, Cout), lambda i: (i, 0, 0)),
            pl.BlockSpec((1, 1, Cout), lambda i: (i, 0, 0)),
        ),
        compiler_params=_cparams(),
    )(patches, w2d)
    return y, jnp.sum(ps, axis=(0, 1)), jnp.sum(pq, axis=(0, 1))


def stats_pallas(x_flat, tile_m):
    M, C = x_flat.shape
    tm = _pick_tile(M, tile_m)
    nt = M // tm
    ps, pq = pl.pallas_call(
        _stats_kernel,
        out_shape=(
            jax.ShapeDtypeStruct((nt, 1, C), jnp.float32),
            jax.ShapeDtypeStruct((nt, 1, C), jnp.float32),
        ),
        grid=(nt,),
        in_specs=[pl.BlockSpec((tm, C), lambda i: (i, 0))],
        out_specs=(
            pl.BlockSpec((1, 1, C), lambda i: (i, 0, 0)),
            pl.BlockSpec((1, 1, C), lambda i: (i, 0, 0)),
        ),
        compiler_params=_cparams(),
    )(x_flat)
    return jnp.sum(ps, axis=(0, 1)), jnp.sum(pq, axis=(0, 1))


def scale_shift_relu_pallas(y, scale, shift, out_dtype, tile_r=1024):
    M, C = y.shape
    (yf,), reps = _lane_dense([y], C)
    s = _tile_chan(scale, reps)
    b = _tile_chan(shift, reps)
    R, L = yf.shape
    tr = _pick_tile(R, tile_r)
    out = pl.pallas_call(
        _scale_shift_relu_kernel,
        out_shape=jax.ShapeDtypeStruct((R, L), out_dtype),
        grid=(R // tr,),
        in_specs=[
            pl.BlockSpec((tr, L), lambda i: (i, 0)),
            pl.BlockSpec((1, L), lambda i: (0, 0)),
            pl.BlockSpec((1, L), lambda i: (0, 0)),
        ],
        out_specs=pl.BlockSpec((tr, L), lambda i: (i, 0)),
        compiler_params=_cparams(),
    )(yf, s, b)
    return out.reshape(M, C)


def bn_add_bn_relu_pallas(y, s1, sh1, r, s2, sh2, tile_r=1024):
    M, C = y.shape
    (yf, rf), reps = _lane_dense([y, r], C)
    s1v, b1v = _tile_chan(s1, reps), _tile_chan(sh1, reps)
    s2v, b2v = _tile_chan(s2, reps), _tile_chan(sh2, reps)
    R, L = yf.shape
    tr = _pick_tile(R, tile_r)
    vec = pl.BlockSpec((1, L), lambda i: (0, 0))
    out = pl.pallas_call(
        _bn_add_bn_relu_kernel,
        out_shape=jax.ShapeDtypeStruct((R, L), jnp.float32),
        grid=(R // tr,),
        in_specs=[
            pl.BlockSpec((tr, L), lambda i: (i, 0)), vec, vec,
            pl.BlockSpec((tr, L), lambda i: (i, 0)), vec, vec,
        ],
        out_specs=pl.BlockSpec((tr, L), lambda i: (i, 0)),
        compiler_params=_cparams(),
    )(yf, s1v, b1v, rf, s2v, b2v)
    return out.reshape(M, C)


# ------------------------- ResBlock forward ------------------------- #

def resblock_forward(x_nchw, params, stride, tile_m=512):
    x = jnp.transpose(x_nchw, (0, 2, 3, 1)).astype(jnp.float32)   # NHWC
    N, H, W, Cin = x.shape
    Cout = params["w1"].shape[-1]

    # conv biases (b1/b2/bs) are only used by the reference: a training-mode BN
    # immediately follows each conv, so the per-channel bias cancels exactly.

    # --- conv1 (3x3, stride) with fused per-tile BN stats --------------------
    p1, (Ho, Wo) = _im2col(x.astype(MXU_DTYPE), 3, stride, 1)
    w1 = params["w1"].reshape(-1, Cout).astype(MXU_DTYPE)
    M = N * Ho * Wo
    y1, s1_sum, s1_sq = conv_bn_stats_pallas(p1, w1, tile_m)
    sc1, sh1 = _bn_scale_shift(s1_sum, s1_sq, M, params["g1"], params["be1"])

    # --- bn1 + relu (lane-dense elementwise); bf16 out feeds conv2's MXU -----
    a1 = scale_shift_relu_pallas(y1, sc1, sh1, out_dtype=MXU_DTYPE)

    # --- conv2 (3x3, stride 1) with fused stats -------------------------------
    p2, _ = _im2col(a1.reshape(N, Ho, Wo, Cout), 3, 1, 1)
    w2 = params["w2"].reshape(-1, Cout).astype(MXU_DTYPE)
    y2, s2_sum, s2_sq = conv_bn_stats_pallas(p2, w2, tile_m)
    sc2, sh2 = _bn_scale_shift(s2_sum, s2_sq, M, params["g2"], params["be2"])

    # --- shortcut: conv1x1(stride)+BN  or  plain BN on the input ---------------
    if stride != 1 or Cin != Cout:
        ps, _ = _im2col(x.astype(MXU_DTYPE), 1, stride, 0)   # (M, Cin): no duplication
        ws = params["ws"].reshape(Cin, Cout).astype(MXU_DTYPE)
        ys, ss_sum, ss_sq = conv_bn_stats_pallas(ps, ws, tile_m)
    else:
        ys = x.reshape(M, Cout)
        ss_sum, ss_sq = stats_pallas(ys, tile_m)
    scs, shs = _bn_scale_shift(ss_sum, ss_sq, M, params["gs"], params["bes"])

    # --- bn2(main) + bn_s(shortcut) + add + relu (fused, lane-dense) -----------
    outf = bn_add_bn_relu_pallas(y2, sc2, sh2, ys, scs, shs)
    out = outf.reshape(N, Ho, Wo, Cout)
    return jnp.transpose(out, (0, 3, 1, 2))                      # back to NCHW


# ------------------------- pure-JAX reference ------------------------- #

def _ref_conv(x, w, b, s, p, dtype):
    wo = jnp.transpose(w, (3, 2, 0, 1)).astype(dtype)             # (K,K,Cin,Cout)->OIHW
    y = lax.conv_general_dilated(
        x.astype(dtype), wo, (s, s), [(p, p), (p, p)],
        dimension_numbers=("NCHW", "OIHW", "NCHW"),
        preferred_element_type=jnp.float32)
    return y + b.reshape(1, -1, 1, 1)


def _ref_bn(y, g, bt):
    mean = y.mean(axis=(0, 2, 3), keepdims=True)
    var = ((y - mean) ** 2).mean(axis=(0, 2, 3), keepdims=True)
    return (y - mean) / jnp.sqrt(var + EPS) * g.reshape(1, -1, 1, 1) \
        + bt.reshape(1, -1, 1, 1)


def ref_forward(x, params, stride, conv_dtype=jnp.float32):
    Cin = x.shape[1]
    Cout = params["w1"].shape[-1]
    y = jax.nn.relu(_ref_bn(_ref_conv(x, params["w1"], params["b1"], stride, 1, conv_dtype),
                            params["g1"], params["be1"]))
    y = _ref_bn(_ref_conv(y, params["w2"], params["b2"], 1, 1, conv_dtype),
                params["g2"], params["be2"])
    if stride != 1 or Cin != Cout:
        r = _ref_bn(_ref_conv(x, params["ws"], params["bs"], stride, 0, conv_dtype),
                    params["gs"], params["bes"])
    else:
        r = _ref_bn(x, params["gs"], params["bes"])
    return jax.nn.relu(y + r)


# ------------------------- main ------------------------- #

if __name__ == "__main__":
    key = jax.random.PRNGKey(0)
    N, Cin, H, W = 2, 4, 16, 16
    Cout, stride = 8, 2

    ks = jax.random.split(key, 13)
    params = {
        # conv weights stored as (K, K, Cin, Cout)
        "w1": 0.1 * jax.random.normal(ks[0], (3, 3, Cin, Cout), jnp.float32),
        "b1": 0.05 * jax.random.normal(ks[1], (Cout,), jnp.float32),
        "w2": 0.1 * jax.random.normal(ks[2], (3, 3, Cout, Cout), jnp.float32),
        "b2": 0.05 * jax.random.normal(ks[3], (Cout,), jnp.float32),
        "ws": 0.1 * jax.random.normal(ks[4], (1, 1, Cin, Cout), jnp.float32),
        "bs": 0.05 * jax.random.normal(ks[5], (Cout,), jnp.float32),
        # BN affine params
        "g1": 1.0 + 0.1 * jax.random.normal(ks[6], (Cout,), jnp.float32),
        "be1": 0.1 * jax.random.normal(ks[7], (Cout,), jnp.float32),
        "g2": 1.0 + 0.1 * jax.random.normal(ks[8], (Cout,), jnp.float32),
        "be2": 0.1 * jax.random.normal(ks[9], (Cout,), jnp.float32),
        "gs": 1.0 + 0.1 * jax.random.normal(ks[10], (Cout,), jnp.float32),
        "bes": 0.1 * jax.random.normal(ks[11], (Cout,), jnp.float32),
    }
    x = jax.random.normal(ks[12], (N, Cin, H, W), jnp.float32)

    # tile_m=32 here just to exercise the multi-tile grid (M=128 -> 4 tiles);
    # at real ResNet scale keep the default 512 (halve it on v7x if VMEM-tight).
    fwd = jax.jit(functools.partial(resblock_forward, stride=stride, tile_m=32))
    out = jax.block_until_ready(fwd(x, params))

    assert out.shape == (N, Cout, H // stride, W // stride), out.shape

    # Tight check vs. a reference using the same bf16 MXU-operand precision.
    ref_mx = jax.block_until_ready(ref_forward(x, params, stride, conv_dtype=MXU_DTYPE))
    err_mx = float(jnp.max(jnp.abs(out - ref_mx)))
    assert jnp.allclose(out, ref_mx, atol=2e-2, rtol=2e-2), err_mx

    # Loose sanity check vs. the pure-f32 module semantics (bf16 operand drift only).
    ref_fp = jax.block_until_ready(ref_forward(x, params, stride, conv_dtype=jnp.float32))
    err_fp = float(jnp.max(jnp.abs(out - ref_fp)))
    assert jnp.allclose(out, ref_fp, atol=1e-1, rtol=1e-1), err_fp

    print("KERNEL_OK")
</pallas_src>

<mosaic_0001>
module attributes {stable_mosaic.version = 11 : i64} {
  func.func @_conv_stats_kernel(%arg0: i32, %arg1: memref<32x36xbf16, #tpu.memory_space<vmem>>, %arg2: memref<36x8xbf16, #tpu.memory_space<vmem>>, %arg3: memref<32x8xf32, #tpu.memory_space<vmem>>, %arg4: memref<1x1x8xf32, #tpu.memory_space<vmem>>, %arg5: memref<1x1x8xf32, #tpu.memory_space<vmem>>) attributes {dimension_semantics = [#tpu.dimension_semantics<parallel>], iteration_bounds = array<i64: 4>, scalar_prefetch = 0 : i64, scratch_operands = 0 : i64, tpu.core_type = #tpu.core_type<tc>, window_params = [{transform_indices = @transform_0, window_bounds = array<i64: 32, 36>}, {pipeline_mode = #tpu.pipeline_mode<synchronous>, transform_indices = @transform_1, window_bounds = array<i64: 36, 8>}, {transform_indices = @transform_2, window_bounds = array<i64: 32, 8>}, {transform_indices = @transform_3, window_bounds = array<i64: 1, 1, 8>}, {transform_indices = @transform_4, window_bounds = array<i64: 1, 1, 8>}]} {
    %c0 = arith.constant 0 : index
    %c0_0 = arith.constant 0 : index
    %0 = vector.load %arg1[%c0, %c0_0] : memref<32x36xbf16, #tpu.memory_space<vmem>>, vector<32x36xbf16>
    %c0_1 = arith.constant 0 : index
    %c0_2 = arith.constant 0 : index
    %1 = vector.load %arg2[%c0_1, %c0_2] : memref<36x8xbf16, #tpu.memory_space<vmem>>, vector<36x8xbf16>
    %cst = arith.constant dense<0.000000e+00> : vector<32x8xf32>
    %2 = tpu.matmul %0, %1, %cst {dimension_numbers = #tpu.dot_dimension_numbers<[1], [0], [0], [1], [0, 0, 1, 1], [], []>} : vector<32x36xbf16>, vector<36x8xbf16>, vector<32x8xf32> -> vector<32x8xf32>
    %c0_3 = arith.constant 0 : index
    %c0_4 = arith.constant 0 : index
    %3 = vector.load %arg3[%c0_3, %c0_4] : memref<32x8xf32, #tpu.memory_space<vmem>>, vector<32x8xf32>
    tpu.vector_store %arg3[%c0_3, %c0_4], %2 {strides = array<i32>} : memref<32x8xf32, #tpu.memory_space<vmem>>, vector<32x8xf32>,
    %cst_5 = arith.constant dense<0.000000e+00> : vector<8xf32>
    %4 = vector.multi_reduction <add>, %2, %cst_5 [0] : vector<32x8xf32> to vector<8xf32>
    %5 = vector.shape_cast %4 : vector<8xf32> to vector<1x8xf32>
    %6 = vector.shape_cast %5 : vector<1x8xf32> to vector<1x1x8xf32>
    %c0_6 = arith.constant 0 : index
    %c0_7 = arith.constant 0 : index
    %c0_8 = arith.constant 0 : index
    %7 = vector.load %arg4[%c0_6, %c0_7, %c0_8] : memref<1x1x8xf32, #tpu.memory_space<vmem>>, vector<1x1x8xf32>
    tpu.vector_store %arg4[%c0_6, %c0_7, %c0_8], %6 {strides = array<i32>} : memref<1x1x8xf32, #tpu.memory_space<vmem>>, vector<1x1x8xf32>,
    %8 = arith.mulf %2, %2 : vector<32x8xf32>
    %cst_9 = arith.constant dense<0.000000e+00> : vector<8xf32>
    %9 = vector.multi_reduction <add>, %8, %cst_9 [0] : vector<32x8xf32> to vector<8xf32>
    %10 = vector.shape_cast %9 : vector<8xf32> to vector<1x8xf32>
    %11 = vector.shape_cast %10 : vector<1x8xf32> to vector<1x1x8xf32>
    %c0_10 = arith.constant 0 : index
    %c0_11 = arith.constant 0 : index
    %c0_12 = arith.constant 0 : index
    %12 = vector.load %arg5[%c0_10, %c0_11, %c0_12] : memref<1x1x8xf32, #tpu.memory_space<vmem>>, vector<1x1x8xf32>
    tpu.vector_store %arg5[%c0_10, %c0_11, %c0_12], %11 {strides = array<i32>} : memref<1x1x8xf32, #tpu.memory_space<vmem>>, vector<1x1x8xf32>,
    return
  }
  func.func @transform_0(%arg0: i32) -> (i32, i32) {
    %c0_i32 = arith.constant 0 : i32
    %c0_i32_0 = arith.constant 0 : i32
    return %arg0, %c0_i32 : i32, i32
  }
  func.func @transform_1(%arg0: i32) -> (i32, i32) {
    %c0_i32 = arith.constant 0 : i32
    %c0_i32_0 = arith.constant 0 : i32
    %c0_i32_1 = arith.constant 0 : i32
    return %c0_i32, %c0_i32_0 : i32, i32
  }
  func.func @transform_2(%arg0: i32) -> (i32, i32) {
    %c0_i32 = arith.constant 0 : i32
    %c0_i32_0 = arith.constant 0 : i32
    return %arg0, %c0_i32 : i32, i32
  }
  func.func @transform_3(%arg0: i32) -> (i32, i32, i32) {
    %c0_i32 = arith.constant 0 : i32
    %c0_i32_0 = arith.constant 0 : i32
    %c0_i32_1 = arith.constant 0 : i32
    return %arg0, %c0_i32, %c0_i32_0 : i32, i32, i32
  }
  func.func @transform_4(%arg0: i32) -> (i32, i32, i32) {
    %c0_i32 = arith.constant 0 : i32
    %c0_i32_0 = arith.constant 0 : i32
    %c0_i32_1 = arith.constant 0 : i32
    return %arg0, %c0_i32, %c0_i32_0 : i32, i32, i32
  }
}

module attributes {stable_mosaic.version = 11 : i64} {
  func.func @_scale_shift_relu_kernel(%arg0: i32, %arg1: memref<8x128xf32, #tpu.memory_space<vmem>>, %arg2: memref<1x128xf32, #tpu.memory_space<vmem>>, %arg3: memref<1x128xf32, #tpu.memory_space<vmem>>, %arg4: memref<8x128xbf16, #tpu.memory_space<vmem>>) attributes {dimension_semantics = [#tpu.dimension_semantics<parallel>], iteration_bounds = array<i64: 1>, scalar_prefetch = 0 : i64, scratch_operands = 0 : i64, tpu.core_type = #tpu.core_type<tc>, window_params = [{transform_indices = @transform_0, window_bounds = array<i64: 8, 128>}, {pipeline_mode = #tpu.pipeline_mode<synchronous>, transform_indices = @transform_1, window_bounds = array<i64: 1, 128>}, {pipeline_mode = #tpu.pipeline_mode<synchronous>, transform_indices = @transform_2, window_bounds = array<i64: 1, 128>}, {transform_indices = @transform_3, window_bounds = array<i64: 8, 128>}]} {
    %c0 = arith.constant 0 : index
    %c0_0 = arith.constant 0 : index
    %0 = vector.load %arg1[%c0, %c0_0] : memref<8x128xf32, #tpu.memory_space<vmem>>, vector<8x128xf32>
    %c0_1 = arith.constant 0 : index
    %c0_2 = arith.constant 0 : index
    %1 = vector.load %arg2[%c0_1, %c0_2] : memref<1x128xf32, #tpu.memory_space<vmem>>, vector<1x128xf32>
    %2 = vector.broadcast %1 : vector<1x128xf32> to vector<8x128xf32>
    %3 = arith.mulf %0, %2 : vector<8x128xf32>
    %c0_3 = arith.constant 0 : index
    %c0_4 = arith.constant 0 : index
    %4 = vector.load %arg3[%c0_3, %c0_4] : memref<1x128xf32, #tpu.memory_space<vmem>>, vector<1x128xf32>
    %5 = vector.broadcast %4 : vector<1x128xf32> to vector<8x128xf32>
    %6 = arith.addf %3, %5 : vector<8x128xf32>
    %cst = arith.constant 0.000000e+00 : f32
    %7 = vector.broadcast %cst : f32 to vector<8x128xf32>
    %8 = arith.maximumf %6, %7 : vector<8x128xf32>
    %9 = arith.truncf %8 : vector<8x128xf32> to vector<8x128xbf16>
    %c0_5 = arith.constant 0 : index
    %c0_6 = arith.constant 0 : index
    %10 = vector.load %arg4[%c0_5, %c0_6] : memref<8x128xbf16, #tpu.memory_space<vmem>>, vector<8x128xbf16>
    tpu.vector_store %arg4[%c0_5, %c0_6], %9 {strides = array<i32>} : memref<8x128xbf16, #tpu.memory_space<vmem>>, vector<8x128xbf16>,
    return
  }
  func.func @transform_0(%arg0: i32) -> (i32, i32) {
    %c0_i32 = arith.constant 0 : i32
    %c0_i32_0 = arith.constant 0 : i32
    return %arg0, %c0_i32 : i32, i32
  }
  func.func @transform_1(%arg0: i32) -> (i32, i32) {
    %c0_i32 = arith.constant 0 : i32
    %c0_i32_0 = arith.constant 0 : i32
    %c0_i32_1 = arith.constant 0 : i32
    return %c0_i32, %c0_i32_0 : i32, i32
  }
  func.func @transform_2(%arg0: i32) -> (i32, i32) {
    %c0_i32 = arith.constant 0 : i32
    %c0_i32_0 = arith.constant 0 : i32
    %c0_i32_1 = arith.constant 0 : i32
    return %c0_i32, %c0_i32_0 : i32, i32
  }
  func.func @transform_3(%arg0: i32) -> (i32, i32) {
    %c0_i32 = arith.constant 0 : i32
    %c0_i32_0 = arith.constant 0 : i32
    return %arg0, %c0_i32 : i32, i32
  }
}

module attributes {stable_mosaic.version = 11 : i64} {
  func.func @_conv_stats_kernel(%arg0: i32, %arg1: memref<32x4xbf16, #tpu.memory_space<vmem>>, %arg2: memref<4x8xbf16, #tpu.memory_space<vmem>>, %arg3: memref<32x8xf32, #tpu.memory_space<vmem>>, %arg4: memref<1x1x8xf32, #tpu.memory_space<vmem>>, %arg5: memref<1x1x8xf32, #tpu.memory_space<vmem>>) attributes {dimension_semantics = [#tpu.dimension_semantics<parallel>], iteration_bounds = array<i64: 4>, scalar_prefetch = 0 : i64, scratch_operands = 0 : i64, tpu.core_type = #tpu.core_type<tc>, window_params = [{transform_indices = @transform_0, window_bounds = array<i64: 32, 4>}, {pipeline_mode = #tpu.pipeline_mode<synchronous>, transform_indices = @transform_1, window_bounds = array<i64: 4, 8>}, {transform_indices = @transform_2, window_bounds = array<i64: 32, 8>}, {transform_indices = @transform_3, window_bounds = array<i64: 1, 1, 8>}, {transform_indices = @transform_4, window_bounds = array<i64: 1, 1, 8>}]} {
    %c0 = arith.constant 0 : index
    %c0_0 = arith.constant 0 : index
    %0 = vector.load %arg1[%c0, %c0_0] : memref<32x4xbf16, #tpu.memory_space<vmem>>, vector<32x4xbf16>
    %c0_1 = arith.constant 0 : index
    %c0_2 = arith.constant 0 : index
    %1 = vector.load %arg2[%c0_1, %c0_2] : memref<4x8xbf16, #tpu.memory_space<vmem>>, vector<4x8xbf16>
    %cst = arith.constant dense<0.000000e+00> : vector<32x8xf32>
    %2 = tpu.matmul %0, %1, %cst {dimension_numbers = #tpu.dot_dimension_numbers<[1], [0], [0], [1], [0, 0, 1, 1], [], []>} : vector<32x4xbf16>, vector<4x8xbf16>, vector<32x8xf32> -> vector<32x8xf32>
    %c0_3 = arith.constant 0 : index
    %c0_4 = arith.constant 0 : index
    %3 = vector.load %arg3[%c0_3, %c0_4] : memref<32x8xf32, #tpu.memory_space<vmem>>, vector<32x8xf32>
    tpu.vector_store %arg3[%c0_3, %c0_4], %2 {strides = array<i32>} : memref<32x8xf32, #tpu.memory_space<vmem>>, vector<32x8xf32>,
    %cst_5 = arith.constant dense<0.000000e+00> : vector<8xf32>
    %4 = vector.multi_reduction <add>, %2, %cst_5 [0] : vector<32x8xf32> to vector<8xf32>
    %5 = vector.shape_cast %4 : vector<8xf32> to vector<1x8xf32>
    %6 = vector.shape_cast %5 : vector<1x8xf32> to vector<1x1x8xf32>
    %c0_6 = arith.constant 0 : index
    %c0_7 = arith.constant 0 : index
    %c0_8 = arith.constant 0 : index
    %7 = vector.load %arg4[%c0_6, %c0_7, %c0_8] : memref<1x1x8xf32, #tpu.memory_space<vmem>>, vector<1x1x8xf32>
    tpu.vector_store %arg4[%c0_6, %c0_7, %c0_8], %6 {strides = array<i32>} : memref<1x1x8xf32, #tpu.memory_space<vmem>>, vector<1x1x8xf32>,
    %8 = arith.mulf %2, %2 : vector<32x8xf32>
    %cst_9 = arith.constant dense<0.000000e+00> : vector<8xf32>
    %9 = vector.multi_reduction <add>, %8, %cst_9 [0] : vector<32x8xf32> to vector<8xf32>
    %10 = vector.shape_cast %9 : vector<8xf32> to vector<1x8xf32>
    %11 = vector.shape_cast %10 : vector<1x8xf32> to vector<1x1x8xf32>
    %c0_10 = arith.constant 0 : index
    %c0_11 = arith.constant 0 : index
    %c0_12 = arith.constant 0 : index
    %12 = vector.load %arg5[%c0_10, %c0_11, %c0_12] : memref<1x1x8xf32, #tpu.memory_space<vmem>>, vector<1x1x8xf32>
    tpu.vector_store %arg5[%c0_10, %c0_11, %c0_12], %11 {strides = array<i32>} : memref<1x1x8xf32, #tpu.memory_space<vmem>>, vector<1x1x8xf32>,
    return
  }
  func.func @transform_0(%arg0: i32) -> (i32, i32) {
    %c0_i32 = arith.constant 0 : i32
    %c0_i32_0 = arith.constant 0 : i32
    return %arg0, %c0_i32 : i32, i32
  }
  func.func @transform_1(%arg0: i32) -> (i32, i32) {
    %c0_i32 = arith.constant 0 : i32
    %c0_i32_0 = arith.constant 0 : i32
    %c0_i32_1 = arith.constant 0 : i32
    return %c0_i32, %c0_i32_0 : i32, i32
  }
  func.func @transform_2(%arg0: i32) -> (i32, i32) {
    %c0_i32 = arith.constant 0 : i32
    %c0_i32_0 = arith.constant 0 : i32
    return %arg0, %c0_i32 : i32, i32
  }
  func.func @transform_3(%arg0: i32) -> (i32, i32, i32) {
    %c0_i32 = arith.constant 0 : i32
    %c0_i32_0 = arith.constant 0 : i32
    %c0_i32_1 = arith.constant 0 : i32
    return %arg0, %c0_i32, %c0_i32_0 : i32, i32, i32
  }
  func.func @transform_4(%arg0: i32) -> (i32, i32, i32) {
    %c0_i32 = arith.constant 0 : i32
    %c0_i32_0 = arith.constant 0 : i32
    %c0_i32_1 = arith.constant 0 : i32
    return %arg0, %c0_i32, %c0_i32_0 : i32, i32, i32
  }
}

module attributes {stable_mosaic.version = 11 : i64} {
  func.func @_conv_stats_kernel(%arg0: i32, %arg1: memref<32x72xbf16, #tpu.memory_space<vmem>>, %arg2: memref<72x8xbf16, #tpu.memory_space<vmem>>, %arg3: memref<32x8xf32, #tpu.memory_space<vmem>>, %arg4: memref<1x1x8xf32, #tpu.memory_space<vmem>>, %arg5: memref<1x1x8xf32, #tpu.memory_space<vmem>>) attributes {dimension_semantics = [#tpu.dimension_semantics<parallel>], iteration_bounds = array<i64: 4>, scalar_prefetch = 0 : i64, scratch_operands = 0 : i64, tpu.core_type = #tpu.core_type<tc>, window_params = [{transform_indices = @transform_0, window_bounds = array<i64: 32, 72>}, {pipeline_mode = #tpu.pipeline_mode<synchronous>, transform_indices = @transform_1, window_bounds = array<i64: 72, 8>}, {transform_indices = @transform_2, window_bounds = array<i64: 32, 8>}, {transform_indices = @transform_3, window_bounds = array<i64: 1, 1, 8>}, {transform_indices = @transform_4, window_bounds = array<i64: 1, 1, 8>}]} {
    %c0 = arith.constant 0 : index
    %c0_0 = arith.constant 0 : index
    %0 = vector.load %arg1[%c0, %c0_0] : memref<32x72xbf16, #tpu.memory_space<vmem>>, vector<32x72xbf16>
    %c0_1 = arith.constant 0 : index
    %c0_2 = arith.constant 0 : index
    %1 = vector.load %arg2[%c0_1, %c0_2] : memref<72x8xbf16, #tpu.memory_space<vmem>>, vector<72x8xbf16>
    %cst = arith.constant dense<0.000000e+00> : vector<32x8xf32>
    %2 = tpu.matmul %0, %1, %cst {dimension_numbers = #tpu.dot_dimension_numbers<[1], [0], [0], [1], [0, 0, 1, 1], [], []>} : vector<32x72xbf16>, vector<72x8xbf16>, vector<32x8xf32> -> vector<32x8xf32>
    %c0_3 = arith.constant 0 : index
    %c0_4 = arith.constant 0 : index
    %3 = vector.load %arg3[%c0_3, %c0_4] : memref<32x8xf32, #tpu.memory_space<vmem>>, vector<32x8xf32>
    tpu.vector_store %arg3[%c0_3, %c0_4], %2 {strides = array<i32>} : memref<32x8xf32, #tpu.memory_space<vmem>>, vector<32x8xf32>,
    %cst_5 = arith.constant dense<0.000000e+00> : vector<8xf32>
    %4 = vector.multi_reduction <add>, %2, %cst_5 [0] : vector<32x8xf32> to vector<8xf32>
    %5 = vector.shape_cast %4 : vector<8xf32> to vector<1x8xf32>
    %6 = vector.shape_cast %5 : vector<1x8xf32> to vector<1x1x8xf32>
    %c0_6 = arith.constant 0 : index
    %c0_7 = arith.constant 0 : index
    %c0_8 = arith.constant 0 : index
    %7 = vector.load %arg4[%c0_6, %c0_7, %c0_8] : memref<1x1x8xf32, #tpu.memory_space<vmem>>, vector<1x1x8xf32>
    tpu.vector_store %arg4[%c0_6, %c0_7, %c0_8], %6 {strides = array<i32>} : memref<1x1x8xf32, #tpu.memory_space<vmem>>, vector<1x1x8xf32>,
    %8 = arith.mulf %2, %2 : vector<32x8xf32>
    %cst_9 = arith.constant dense<0.000000e+00> : vector<8xf32>
    %9 = vector.multi_reduction <add>, %8, %cst_9 [0] : vector<32x8xf32> to vector<8xf32>
    %10 = vector.shape_cast %9 : vector<8xf32> to vector<1x8xf32>
    %11 = vector.shape_cast %10 : vector<1x8xf32> to vector<1x1x8xf32>
    %c0_10 = arith.constant 0 : index
    %c0_11 = arith.constant 0 : index
    %c0_12 = arith.constant 0 : index
    %12 = vector.load %arg5[%c0_10, %c0_11, %c0_12] : memref<1x1x8xf32, #tpu.memory_space<vmem>>, vector<1x1x8xf32>
    tpu.vector_store %arg5[%c0_10, %c0_11, %c0_12], %11 {strides = array<i32>} : memref<1x1x8xf32, #tpu.memory_space<vmem>>, vector<1x1x8xf32>,
    return
  }
  func.func @transform_0(%arg0: i32) -> (i32, i32) {
    %c0_i32 = arith.constant 0 : i32
    %c0_i32_0 = arith.constant 0 : i32
    return %arg0, %c0_i32 : i32, i32
  }
  func.func @transform_1(%arg0: i32) -> (i32, i32) {
    %c0_i32 = arith.constant 0 : i32
    %c0_i32_0 = arith.constant 0 : i32
    %c0_i32_1 = arith.constant 0 : i32
    return %c0_i32, %c0_i32_0 : i32, i32
  }
  func.func @transform_2(%arg0: i32) -> (i32, i32) {
    %c0_i32 = arith.constant 0 : i32
    %c0_i32_0 = arith.constant 0 : i32
    return %arg0, %c0_i32 : i32, i32
  }
  func.func @transform_3(%arg0: i32) -> (i32, i32, i32) {
    %c0_i32 = arith.constant 0 : i32
    %c0_i32_0 = arith.constant 0 : i32
    %c0_i32_1 = arith.constant 0 : i32
    return %arg0, %c0_i32, %c0_i32_0 : i32, i32, i32
  }
  func.func @transform_4(%arg0: i32) -> (i32, i32, i32) {
    %c0_i32 = arith.constant 0 : i32
    %c0_i32_0 = arith.constant 0 : i32
    %c0_i32_1 = arith.constant 0 : i32
    return %arg0, %c0_i32, %c0_i32_0 : i32, i32, i32
  }
}

module attributes {stable_mosaic.version = 11 : i64} {
  func.func @_bn_add_bn_relu_kernel(%arg0: i32, %arg1: memref<8x128xf32, #tpu.memory_space<vmem>>, %arg2: memref<1x128xf32, #tpu.memory_space<vmem>>, %arg3: memref<1x128xf32, #tpu.memory_space<vmem>>, %arg4: memref<8x128xf32, #tpu.memory_space<vmem>>, %arg5: memref<1x128xf32, #tpu.memory_space<vmem>>, %arg6: memref<1x128xf32, #tpu.memory_space<vmem>>, %arg7: memref<8x128xf32, #tpu.memory_space<vmem>>) attributes {dimension_semantics = [#tpu.dimension_semantics<parallel>], iteration_bounds = array<i64: 1>, scalar_prefetch = 0 : i64, scratch_operands = 0 : i64, tpu.core_type = #tpu.core_type<tc>, window_params = [{transform_indices = @transform_0, window_bounds = array<i64: 8, 128>}, {pipeline_mode = #tpu.pipeline_mode<synchronous>, transform_indices = @transform_1, window_bounds = array<i64: 1, 128>}, {pipeline_mode = #tpu.pipeline_mode<synchronous>, transform_indices = @transform_2, window_bounds = array<i64: 1, 128>}, {transform_indices = @transform_3, window_bounds = array<i64: 8, 128>}, {pipeline_mode = #tpu.pipeline_mode<synchronous>, transform_indices = @transform_4, window_bounds = array<i64: 1, 128>}, {pipeline_mode = #tpu.pipeline_mode<synchronous>, transform_indices = @transform_5, window_bounds = array<i64: 1, 128>}, {transform_indices = @transform_6, window_bounds = array<i64: 8, 128>}]} {
    %c0 = arith.constant 0 : index
    %c0_0 = arith.constant 0 : index
    %0 = vector.load %arg1[%c0, %c0_0] : memref<8x128xf32, #tpu.memory_space<vmem>>, vector<8x128xf32>
    %c0_1 = arith.constant 0 : index
    %c0_2 = arith.constant 0 : index
    %1 = vector.load %arg2[%c0_1, %c0_2] : memref<1x128xf32, #tpu.memory_space<vmem>>, vector<1x128xf32>
    %2 = vector.broadcast %1 : vector<1x128xf32> to vector<8x128xf32>
    %3 = arith.mulf %0, %2 : vector<8x128xf32>
    %c0_3 = arith.constant 0 : index
    %c0_4 = arith.constant 0 : index
    %4 = vector.load %arg3[%c0_3, %c0_4] : memref<1x128xf32, #tpu.memory_space<vmem>>, vector<1x128xf32>
    %5 = vector.broadcast %4 : vector<1x128xf32> to vector<8x128xf32>
    %6 = arith.addf %3, %5 : vector<8x128xf32>
    %c0_5 = arith.constant 0 : index
    %c0_6 = arith.constant 0 : index
    %7 = vector.load %arg4[%c0_5, %c0_6] : memref<8x128xf32, #tpu.memory_space<vmem>>, vector<8x128xf32>
    %c0_7 = arith.constant 0 : index
    %c0_8 = arith.constant 0 : index
    %8 = vector.load %arg5[%c0_7, %c0_8] : memref<1x128xf32, #tpu.memory_space<vmem>>, vector<1x128xf32>
    %9 = vector.broadcast %8 : vector<1x128xf32> to vector<8x128xf32>
    %10 = arith.mulf %7, %9 : vector<8x128xf32>
    %c0_9 = arith.constant 0 : index
    %c0_10 = arith.constant 0 : index
    %11 = vector.load %arg6[%c0_9, %c0_10] : memref<1x128xf32, #tpu.memory_space<vmem>>, vector<1x128xf32>
    %12 = vector.broadcast %11 : vector<1x128xf32> to vector<8x128xf32>
    %13 = arith.addf %10, %12 : vector<8x128xf32>
    %14 = arith.addf %6, %13 : vector<8x128xf32>
    %cst = arith.constant 0.000000e+00 : f32
    %15 = vector.broadcast %cst : f32 to vector<8x128xf32>
    %16 = arith.maximumf %14, %15 : vector<8x128xf32>
    %c0_11 = arith.constant 0 : index
    %c0_12 = arith.constant 0 : index
    %17 = vector.load %arg7[%c0_11, %c0_12] : memref<8x128xf32, #tpu.memory_space<vmem>>, vector<8x128xf32>
    tpu.vector_store %arg7[%c0_11, %c0_12], %16 {strides = array<i32>} : memref<8x128xf32, #tpu.memory_space<vmem>>, vector<8x128xf32>,
    return
  }
  func.func @transform_0(%arg0: i32) -> (i32, i32) {
    %c0_i32 = arith.constant 0 : i32
    %c0_i32_0 = arith.constant 0 : i32
    return %arg0, %c0_i32 : i32, i32
  }
  func.func @transform_1(%arg0: i32) -> (i32, i32) {
    %c0_i32 = arith.constant 0 : i32
    %c0_i32_0 = arith.constant 0 : i32
    %c0_i32_1 = arith.constant 0 : i32
    return %c0_i32, %c0_i32_0 : i32, i32
  }
  func.func @transform_2(%arg0: i32) -> (i32, i32) {
    %c0_i32 = arith.constant 0 : i32
    %c0_i32_0 = arith.constant 0 : i32
    %c0_i32_1 = arith.constant 0 : i32
    return %c0_i32, %c0_i32_0 : i32, i32
  }
  func.func @transform_3(%arg0: i32) -> (i32, i32) {
    %c0_i32 = arith.constant 0 : i32
    %c0_i32_0 = arith.constant 0 : i32
    return %arg0, %c0_i32 : i32, i32
  }
  func.func @transform_4(%arg0: i32) -> (i32, i32) {
    %c0_i32 = arith.constant 0 : i32
    %c0_i32_0 = arith.constant 0 : i32
    %c0_i32_1 = arith.constant 0 : i32
    return %c0_i32, %c0_i32_0 : i32, i32
  }
  func.func @transform_5(%arg0: i32) -> (i32, i32) {
    %c0_i32 = arith.constant 0 : i32
    %c0_i32_0 = arith.constant 0 : i32
    %c0_i32_1 = arith.constant 0 : i32
    return %c0_i32, %c0_i32_0 : i32, i32
  }
  func.func @transform_6(%arg0: i32) -> (i32, i32) {
    %c0_i32 = arith.constant 0 : i32
    %c0_i32_0 = arith.constant 0 : i32
    return %arg0, %c0_i32 : i32, i32
  }
}

</mosaic_0001>

<bundles_post_ra>
// kernel: tile.38
= control target key start
LH: loop header
LB: loop body
LE: loop exit
PB: predicated region body
PF: predicated region fallthrough
CT: control target
= control target key end

     0   :  { %s28_s0 = inlined_call_operand.vmem [shape: f32[8], index: 0, kind: input, shape index: {}]   ;;  %s29_s1 = inlined_call_operand.vmem [shape: f32[16,8], index: 1, kind: output, shape index: {}]  }
   0x1   :  { %v4_v0 = vld [vmem:[%s28_s0] ss:$0 sm:$0xff] }
   0x2   :  { %5 = vst [vmem:[%s29_s1] sm:$0xff] %v4_v0  ;;  %8 = vst [vmem:[%s29_s1 + $0x8] sm:$0xff] %v4_v0 }

// kernel: tile.39
= control target key start
LH: loop header
LB: loop body
LE: loop exit
PB: predicated region body
PF: predicated region fallthrough
CT: control target
= control target key end

     0   :  { %s133_s10 = smov 120   ;;  %s134_s11 = smov 104   ;;  %vm3_vm0 = vcmask 64512   ;;  %vm9_vm1 = vcmask 1048512   ;;  %vm15_vm2 = vcmask 982912   ;;  %vm21_vm3 = vcmask 917312   ;;  %s209_s0 = inlined_call_operand.vmem [shape: f32[16,8], index: 0, kind: input, shape index: {}]   ;;  %s210_s1 = inlined_call_operand.vmem [shape: f32[1,128], index: 1, kind: output, shape index: {}]  }
   0x1   :  { %v103_v0 = vld [vmem:[%s209_s0 + $0xf] sm:$0x1]   ;;  %v105_v1 = vld [vmem:[%s209_s0 + $0xd] sm:$0x1]   ;;  %v104_v2 = vld [vmem:[%s209_s0 + $0xe] sm:$0x1]  }
   0x2   :  { %7 = vrot.lane.b32.xlu0 %v103_v0, %s133_s10  ;;  %19 = vrot.lane.b32.xlu1 %v105_v1, %s134_s11  ;;  %v106_v3 = vld [vmem:[%s209_s0 + $0xc] sm:$0x1]   ;;  %s135_s16 = smov 112   ;;  %s136_s17 = smov 96   ;;  %v107_v4 = vld [vmem:[%s209_s0 + $0xb] sm:$0x1]  }
   0x3   :  { %v108_v5 = vld [vmem:[%s209_s0 + $0xa] sm:$0x1]   ;;  %v2_v6 = vld [vmem:[%s209_s0] sm:$0x1]   ;;  %s137_s24 = smov 88   ;;  %s138_s25 = smov 80  }
   0x4   :  { %4 = vst.msk [vmem:[#allocation0] sm:$0x1] %vm3_vm0, %v2_v6   ;;  %v109_v7 = vld [vmem:[%s209_s0 + $0x9] sm:$0x1]   ;;  %v110_v8 = vld [vmem:[%s209_s0 + $0x8] sm:$0x1]  }
   0x5   :  { %s139_s30 = smov 72   ;;  %s140_s2 = smov 64   ;;  %v111_v9 = vld [vmem:[%s209_s0 + $0x7] sm:$0x1]   ;;  %v112_v10 = vld [vmem:[%s209_s0 + $0x6] sm:$0x1]  }
   0x6   :  { %13 = vrot.lane.b32.xlu0 %v104_v2, %s135_s16  ;;  %25 = vrot.lane.b32.xlu1 %v106_v3, %s136_s17  ;;  %s141_s7 = smov 56   ;;  %s142_s8 = smov 48   ;;  %v113_v11 = vld [vmem:[%s209_s0 + $0x5] sm:$0x1]   ;;  %v114_v12 = vld [vmem:[%s209_s0 + $0x4] sm:$0x1]  }
   0x7   :  { %s143_s13 = smov 40   ;;  %s144_s14 = smov 32   ;;  %v115_v13 = vld [vmem:[%s209_s0 + $0x3] sm:$0x1]   ;;  %v116_v14 = vld [vmem:[%s209_s0 + $0x2] sm:$0x1]  }
   0x8   :  { %s145_s19 = smov 24   ;;  %s146_s20 = smov 16   ;;  %v117_v15 = vld [vmem:[%s209_s0 + $0x1] sm:$0x1]   ;;  %vm27_vm4 = vcmask 851712   ;;  %vm33_vm5 = vcmask 786112  }
   0x9   :  { %s147_s0 = smov 8   ;;  %vm39_vm6 = vcmask 720512   ;;  %vm45_vm7 = vcmask 654912   ;;  %vm51_vm8 = vcmask 589312   ;;  %vm57_vm9 = vcmask 523712  }
   0xa   :  { %31 = vrot.lane.b32.xlu0 %v107_v4, %s137_s24  ;;  %37 = vrot.lane.b32.xlu1 %v108_v5, %s138_s25  ;;  %vm63_vm10 = vcmask 458112   ;;  %vm69_vm11 = vcmask 392512   ;;  %vm75_vm12 = vcmask 326912   ;;  %vm81_vm13 = vcmask 261312  }
   0xb   :  { %vm87_vm14 = vcmask 195712   ;;  %vm93_vm15 = vcmask 130112  }
   0xe   :  { %43 = vrot.lane.b32.xlu0 %v109_v7, %s139_s30  ;;  %49 = vrot.lane.b32.xlu1 %v110_v8, %s140_s2 }
  0x12   :  { %55 = vrot.lane.b32.xlu0 %v111_v9, %s141_s7  ;;  %61 = vrot.lane.b32.xlu1 %v112_v10, %s142_s8 }
  0x16   :  { %67 = vrot.lane.b32.xlu0 %v113_v11, %s143_s13  ;;  %73 = vrot.lane.b32.xlu1 %v114_v12, %s144_s14 }
  0x1a   :  { %79 = vrot.lane.b32.xlu0 %v115_v13, %s145_s19  ;;  %85 = vrot.lane.b32.xlu1 %v116_v14, %s146_s20 }
  0x1e   :  { %91 = vrot.lane.b32.xlu0 %v117_v15, %s147_s0 }
  0x74   :  { %v8_v16 = vpop.permute.xlu0 %7   ;;  %v20_v17 = vpop.permute.xlu1 %19  }
  0x75   :  { %10 = vst.msk [vmem:[#allocation0] sm:$0x1] %vm9_vm1, %v8_v16  }
  0x78   :  { %v14_v18 = vpop.permute.xlu0 %13   ;;  %v26_v19 = vpop.permute.xlu1 %25  }
  0x79   :  { %16 = vst.msk [vmem:[#allocation0] sm:$0x1] %vm15_vm2, %v14_v18  }
  0x7a   :  { %22 = vst.msk [vmem:[#allocation0] sm:$0x1] %vm21_vm3, %v20_v17  }
  0x7b   :  { %28 = vst.msk [vmem:[#allocation0] sm:$0x1] %vm27_vm4, %v26_v19  }
  0x7c   :  { %v32_v20 = vpop.permute.xlu0 %31   ;;  %v38_v21 = vpop.permute.xlu1 %37  }
  0x7d   :  { %34 = vst.msk [vmem:[#allocation0] sm:$0x1] %vm33_vm5, %v32_v20  }
  0x7e   :  { %40 = vst.msk [vmem:[#allocation0] sm:$0x1] %vm39_vm6, %v38_v21  }
  0x80   :  { %v44_v22 = vpop.permute.xlu0 %43   ;;  %v50_v23 = vpop.permute.xlu1 %49  }
  0x81   :  { %46 = vst.msk [vmem:[#allocation0] sm:$0x1] %vm45_vm7, %v44_v22  }
  0x82   :  { %52 = vst.msk [vmem:[#allocation0] sm:$0x1] %vm51_vm8, %v50_v23  }
  0x84   :  { %v56_v24 = vpop.permute.xlu0 %55   ;;  %v62_v25 = vpop.permute.xlu1 %61  }
  0x85   :  { %58 = vst.msk [vmem:[#allocation0] sm:$0x1] %vm57_vm9, %v56_v24  }
  0x86   :  { %64 = vst.msk [vmem:[#allocation0] sm:$0x1] %vm63_vm10, %v62_v25  }
  0x88   :  { %v68_v26 = vpop.permute.xlu0 %67   ;;  %v74_v27 = vpop.permute.xlu1 %73  }
  0x89   :  { %70 = vst.msk [vmem:[#allocation0] sm:$0x1] %vm69_vm11, %v68_v26  }
  0x8a   :  { %76 = vst.msk [vmem:[#allocation0] sm:$0x1] %vm75_vm12, %v74_v27  }
  0x8c   :  { %v80_v28 = vpop.permute.xlu0 %79   ;;  %v86_v29 = vpop.permute.xlu1 %85  }
  0x8d   :  { %82 = vst.msk [vmem:[#allocation0] sm:$0x1] %vm81_vm13, %v80_v28  }
  0x8e   :  { %88 = vst.msk [vmem:[#allocation0] sm:$0x1] %vm87_vm14, %v86_v29  }
  0x90   :  { %v92_v30 = vpop.permute.xlu0 %91  }
  0x91   :  { %94 = vst.msk [vmem:[#allocation0] sm:$0x1] %vm93_vm15, %v92_v30  }
  0x98   :  { %v99_v31 = vld [vmem:[#allocation0] sm:$0x1] }
  0x99   :  { %102 = vst [vmem:[%s210_s1] sm:$0x1] %v99_v31 }

// kernel: resblock_forward.6
= control target key start
LH: loop header
LB: loop body
LE: loop exit
PB: predicated region body
PF: predicated region fallthrough
CT: control target
= control target key end

     0   :  { %s72_s0 = inlined_call_operand.vmem [shape: f32[8,128], index: 0, kind: input, shape index: {}]   ;;  %s73_s1 = inlined_call_operand.vmem [shape: f32[1,128], index: 1, kind: input, shape index: {}]   ;;  %s74_s2 = inlined_call_operand.vmem [shape: f32[1,128], index: 2, kind: input, shape index: {}]   ;;  %s75_s3 = inlined_call_operand.vmem [shape: bf16[8,128], index: 3, kind: output, shape index: {}]  }
   0x1   :  { %v14_v0 = vld [vmem:[%s72_s0] sm:$0xff] }
   0x2   :  { %v38_v1 = vld [vmem:[%s73_s1] ss:$0 sm:$0xff] }
   0x3   :  { %v39_v2 = vld [vmem:[%s74_s2] ss:$0 sm:$0xff]  ;;  %v22_v3 = vmul.f32 %v38_v1, %v14_v0 }
   0x5   :  { %v30_v4 = vadd.f32 %v39_v2, %v22_v3 }
   0x7   :  { %v31_v5 = vmax.f32 %v30_v4, 0.0 }
   0x9   :  { %v32_v6 = vpack.c.bf16 %v31_v5, %v31_v5 }
   0xb   :  { %33 = vst [vmem:[%s75_s3] sm:$0xf] %v32_v6 }

// kernel: resblock_forward.5
= control target key start
LH: loop header
LB: loop body
LE: loop exit
PB: predicated region body
PF: predicated region fallthrough
CT: control target
= control target key end

     0   :  { %s537_s15 = smov 0   ;;  %s586_s0 = inlined_call_operand.vmem [shape: bf16[128,36], index: 0, kind: input, shape index: {}]   ;;  %s587_s1 = inlined_call_operand.vmem [shape: bf16[36,8], index: 1, kind: input, shape index: {}]   ;;  %s588_s2 = inlined_call_operand.vmem [shape: f32[128,8], index: 2, kind: output, shape index: {0}]   ;;  %s589_s3 = inlined_call_operand.vmem [shape: f32[4,1,8], index: 3, kind: output, shape index: {1}]   ;;  %s590_s4 = inlined_call_operand.vmem [shape: f32[4,1,8], index: 4, kind: output, shape index: {2}]  }
   0x1 LB: > { %s543_s16 = sadd.s32 4294967295, %s510_s15   ;;  %p461_p0 = scmp.ge.s32.totalorder %s510_s15, 1  ;;  %s510_s15 = sphi %s537_s15, %s15_s15  }
   0x2   : > { %p168_p1 = scmp.lt.s32.totalorder %s510_s15, 5 }
   0x4   : > { %p169_p2 = pnand %p461_p0, %p168_p1 }
   0x5   : > { %s462_s21 = sshll.u32 (!%p169_p2), %s543_s16, 2  ;;  %p212_p4 = scmp.lt.s32.totalorder (!%p169_p2), %s543_s16, 3 }
   0x6   : > { %172 = sbr.rel (%p169_p2) target bundleno = 245 (0xf5), region = 28  ;;  %p201_p3 = scmp.lt.s32.totalorder (!%p169_p2), %s462_s21, 15 }
   0xb   : > { %v499_v0 = vld [vmem:[%s587_s1 + $0x10] ss:$0 sps:$4 sm:$0x33]   ;;  %vm260_vm0 = vcmask 1041408   ;;  %v500_v1 = vld [vmem:[%s587_s1 + $0x8] sm:$0xff]   ;;  %v501_v3 = vld [vmem:[%s587_s1] sm:$0xff]  }
   0xc   : > { %490 = vmatprep.subr.msk.bf16.mxu0 %vm260_vm0, %v499_v0  ;;  %v262_v2 = vsel %vm260_vm0, %v499_v0, 0  ;;  %s592_s21 = smov (!%p201_p3, %s462_s21), 15  ;;  %vm253_vm1 = vcmask 293888   ;;  %vm313_vm2 = vcmask 64512   ;;  %s594_s16 = smov (!%p212_p4, %s543_s16), 3  ;;  %vm331_vm3 = vcmask 57344  }
   0xd   : > { %481 = vmatpush3.bf16.msra.mxu0 %v262_v2  ;;  %s463_s24 = sshll.u32 %s592_s21, 2  ;;  %s465_s28 = sshll.u32 %s592_s21, 3 }
   0xe   : > { %482 = vmatprep.subr.bf16.mxu0 %v500_v1  ;;  %s204_s27 = scalar_lea.vmem %s586_s0, %s463_s24  ;;  %s210_s5 = scalar_lea.vmem %s588_s2, %s465_s28 }
   0xf   : > { %v502_v4 = vld [vmem:[%s204_s27] sm:$0xff]   ;;  %v503_v5 = vld [vmem:[%s204_s27 + $0x8] sm:$0xff]   ;;  %s214_s8 = scalar_lea.vmem %s589_s3, %s594_s16  ;;  %s217_s11 = scalar_lea.vmem %s590_s4, %s594_s16 }
  0x10   : > { %486 = vmatprep.mubr.msk.bf16.mxu0 %vm253_vm1, %v502_v4 }
  0x11   : > { %483 = vmatpush3.bf16.msra.mxu0 %v500_v1 }
  0x12   : > { %484 = vmatprep.subr.bf16.mxu0 %v501_v3 }
  0x15   : > { %485 = vmatpush3.bf16.msra.mxu0 %v501_v3 }
  0x18   : > { %487 = vmatmul.mubr.msk.bf16.vlgmr.msra.gmra.mxu0 %vm253_vm1, %v503_v5 }
  0xd8   : > { %v488_v6 = vpop.f32.mrf.mxu0 }
  0xd9   : > { %316 = vst.msk [vmem:[%s210_s5 + $0x10] sm:$0xff] %vm313_vm2, %v488_v6  ;;  %v335_v11 = vmul.f32 %v488_v6, %v488_v6  ;;  %v321_v16 = vsel %vm313_vm2, %v488_v6, 0.0 }
  0xda   : > { %v298_v7 = vpop.f32.mrf.mxu0 }
  0xdb   : > { %314 = vst.msk [vmem:[%s210_s5] sm:$0xff] %vm313_vm2, %v298_v7  ;;  %v333_v9 = vmul.f32 %v298_v7, %v298_v7  ;;  %v318_v12 = vsel %vm313_vm2, %v298_v7, 0.0  ;;  %v340_v22 = vsel %vm313_vm2, %v335_v11, 0.0 }
  0xdc   : > { %v489_v8 = vpop.f32.mrf.mxu0 }
  0xdd   : > { %317 = vst.msk [vmem:[%s210_s5 + $0x18] sm:$0xff] %vm313_vm2, %v489_v8  ;;  %v337_v17 = vsel %vm313_vm2, %v333_v9, 0.0  ;;  %v336_v18 = vmul.f32 %v489_v8, %v489_v8  ;;  %v323_v23 = vsel %vm313_vm2, %v489_v8, 0.0 }
  0xde   : > { %v301_v10 = vpop.f32.mrf.mxu0 }
  0xdf   : > { %315 = vst.msk [vmem:[%s210_s5 + $0x8] sm:$0xff] %vm313_vm2, %v301_v10  ;;  %v319_v13 = vsel %vm313_vm2, %v301_v10, 0.0  ;;  %v334_v14 = vmul.f32 %v301_v10, %v301_v10  ;;  %v342_v26 = vsel %vm313_vm2, %v336_v18, 0.0 }
  0xe0   : > { %v320_v15 = vadd.f32 %v319_v13, %v318_v12 }
  0xe1   : > { %v338_v19 = vsel %vm313_vm2, %v334_v14, 0.0 }
  0xe2   : > { %v322_v20 = vadd.f32 %v321_v16, %v320_v15  ;;  %v339_v21 = vadd.f32 %v338_v19, %v337_v17 }
  0xe4   : > { %v324_v24 = vadd.f32 %v323_v23, %v322_v20  ;;  %v341_v25 = vadd.f32 %v340_v22, %v339_v21 }
  0xe6   : > { %v325_v27 = vrot.slane %v324_v24, 4  ;;  %v343_v28 = vadd.f32 %v342_v26, %v341_v25 }
  0xe8   : > { %v326_v29 = vadd.f32 %v325_v27, %v324_v24  ;;  %v344_v30 = vrot.slane %v343_v28, 4 }
  0xea   : > { %v327_v31 = vrot.slane %v326_v29, 2  ;;  %v345_v32 = vadd.f32 %v344_v30, %v343_v28 }
  0xec   : > { %v328_v33 = vadd.f32 %v327_v31, %v326_v29  ;;  %v346_v34 = vrot.slane %v345_v32, 2 }
  0xee   : > { %v329_v35 = vrot.slane %v328_v33, 1  ;;  %v347_v36 = vadd.f32 %v346_v34, %v345_v32 }
  0xf0   : > { %v330_v37 = vadd.f32 %v329_v35, %v328_v33  ;;  %v348_v38 = vrot.slane %v347_v36, 1 }
  0xf2   : > { %332 = vst.msk [vmem:[%s214_s8] sm:$0x1] %vm331_vm3, %v330_v37  ;;  %v349_v39 = vadd.f32 %v348_v38, %v347_v36 }
  0xf4   : > { %350 = vst.msk [vmem:[%s217_s11] sm:$0x1] %vm331_vm3, %v349_v39 }
  0xf5 PF: > { %s15_s15 = sadd.s32 1, %s510_s15  }
  0xf6   : > { %p12_p5 = scmp.ge.s32.totalorder %s15_s15, 6  }
  0xf8   :  { %14 = sbr.rel (!%p12_p5) target bundleno = 1 (0x1), region = 82 }

// kernel: resblock_forward.8
= control target key start
LH: loop header
LB: loop body
LE: loop exit
PB: predicated region body
PF: predicated region fallthrough
CT: control target
= control target key end

     0   :  { %s506_s15 = smov 0   ;;  %s549_s0 = inlined_call_operand.vmem [shape: bf16[128,4], index: 0, kind: input, shape index: {}]   ;;  %s550_s1 = inlined_call_operand.vmem [shape: bf16[4,8], index: 1, kind: input, shape index: {}]   ;;  %s551_s2 = inlined_call_operand.vmem [shape: f32[128,8], index: 2, kind: output, shape index: {0}]   ;;  %s552_s3 = inlined_call_operand.vmem [shape: f32[4,1,8], index: 3, kind: output, shape index: {1}]   ;;  %s553_s4 = inlined_call_operand.vmem [shape: f32[4,1,8], index: 4, kind: output, shape index: {2}]  }
   0x1 LB: > { %s512_s16 = sadd.s32 4294967295, %s479_s15   ;;  %p442_p0 = scmp.ge.s32.totalorder %s479_s15, 1  ;;  %s479_s15 = sphi %s506_s15, %s15_s15  }
   0x2   : > { %p168_p1 = scmp.lt.s32.totalorder %s479_s15, 5 }
   0x4   : > { %p169_p2 = pnand %p442_p0, %p168_p1 }
   0x5   : > { %s443_s19 = sshll.u32 (!%p169_p2), %s512_s16, 2  ;;  %p212_p4 = scmp.lt.s32.totalorder (!%p169_p2), %s512_s16, 3 }
   0x6   : > { %172 = sbr.rel (%p169_p2) target bundleno = 237 (0xed), region = 28  ;;  %p201_p3 = scmp.lt.s32.totalorder (!%p169_p2), %s443_s19, 15 }
   0xb   : > { %v223_v0 = vld [vmem:[%s550_s1] sm:$0x3]  ;;  %vm241_vm0 = vcmask 1041408   ;;  %s555_s19 = smov (!%p201_p3, %s443_s19), 15  ;;  %vm234_vm1 = vcmask 31744   ;;  %vm294_vm2 = vcmask 64512  }
   0xc   : > { %462 = vmatprep.subr.msk.bf16.mxu0 %vm241_vm0, %v223_v0  ;;  %v243_v1 = vsel %vm241_vm0, %v223_v0, 0  ;;  %s444_s20 = sshll.u32 %s555_s19, 2  ;;  %s446_s24 = sshll.u32 %s555_s19, 3  ;;  %vm312_vm3 = vcmask 57344  }
   0xd   : > { %457 = vmatpush3.bf16.msra.mxu0 %v243_v1  ;;  %s204_s23 = scalar_lea.vmem %s549_s0, %s444_s20  ;;  %s210_s27 = scalar_lea.vmem %s551_s2, %s446_s24 }
   0xe   : > { %v471_v2 = vld [vmem:[%s204_s23] sm:$0xff]   ;;  %v472_v3 = vld [vmem:[%s204_s23 + $0x8] sm:$0xff]   ;;  %s557_s16 = smov (!%p212_p4, %s512_s16), 3 }
   0xf   : > { %458 = vmatprep.mubr.msk.bf16.mxu0 %vm234_vm1, %v471_v2  ;;  %s214_s30 = scalar_lea.vmem %s552_s3, %s557_s16  ;;  %s217_s7 = scalar_lea.vmem %s553_s4, %s557_s16 }
  0x10   : > { %459 = vmatmul.mubr.msk.bf16.vlgmr.msra.gmra.mxu0 %vm234_vm1, %v472_v3 }
  0xd0   : > { %v460_v4 = vpop.f32.mrf.mxu0 }
  0xd1   : > { %297 = vst.msk [vmem:[%s210_s27 + $0x10] sm:$0xff] %vm294_vm2, %v460_v4  ;;  %v316_v9 = vmul.f32 %v460_v4, %v460_v4  ;;  %v302_v14 = vsel %vm294_vm2, %v460_v4, 0.0 }
  0xd2   : > { %v279_v5 = vpop.f32.mrf.mxu0 }
  0xd3   : > { %295 = vst.msk [vmem:[%s210_s27] sm:$0xff] %vm294_vm2, %v279_v5  ;;  %v314_v7 = vmul.f32 %v279_v5, %v279_v5  ;;  %v299_v10 = vsel %vm294_vm2, %v279_v5, 0.0  ;;  %v321_v20 = vsel %vm294_vm2, %v316_v9, 0.0 }
  0xd4   : > { %v461_v6 = vpop.f32.mrf.mxu0 }
  0xd5   : > { %298 = vst.msk [vmem:[%s210_s27 + $0x18] sm:$0xff] %vm294_vm2, %v461_v6  ;;  %v318_v15 = vsel %vm294_vm2, %v314_v7, 0.0  ;;  %v317_v16 = vmul.f32 %v461_v6, %v461_v6  ;;  %v304_v21 = vsel %vm294_vm2, %v461_v6, 0.0 }
  0xd6   : > { %v282_v8 = vpop.f32.mrf.mxu0 }
  0xd7   : > { %296 = vst.msk [vmem:[%s210_s27 + $0x8] sm:$0xff] %vm294_vm2, %v282_v8  ;;  %v300_v11 = vsel %vm294_vm2, %v282_v8, 0.0  ;;  %v315_v12 = vmul.f32 %v282_v8, %v282_v8  ;;  %v323_v24 = vsel %vm294_vm2, %v317_v16, 0.0 }
  0xd8   : > { %v301_v13 = vadd.f32 %v300_v11, %v299_v10 }
  0xd9   : > { %v319_v17 = vsel %vm294_vm2, %v315_v12, 0.0 }
  0xda   : > { %v303_v18 = vadd.f32 %v302_v14, %v301_v13  ;;  %v320_v19 = vadd.f32 %v319_v17, %v318_v15 }
  0xdc   : > { %v305_v22 = vadd.f32 %v304_v21, %v303_v18  ;;  %v322_v23 = vadd.f32 %v321_v20, %v320_v19 }
  0xde   : > { %v306_v25 = vrot.slane %v305_v22, 4  ;;  %v324_v26 = vadd.f32 %v323_v24, %v322_v23 }
  0xe0   : > { %v307_v27 = vadd.f32 %v306_v25, %v305_v22  ;;  %v325_v28 = vrot.slane %v324_v26, 4 }
  0xe2   : > { %v308_v29 = vrot.slane %v307_v27, 2  ;;  %v326_v30 = vadd.f32 %v325_v28, %v324_v26 }
  0xe4   : > { %v309_v31 = vadd.f32 %v308_v29, %v307_v27  ;;  %v327_v32 = vrot.slane %v326_v30, 2 }
  0xe6   : > { %v310_v33 = vrot.slane %v309_v31, 1  ;;  %v328_v34 = vadd.f32 %v327_v32, %v326_v30 }
  0xe8   : > { %v311_v35 = vadd.f32 %v310_v33, %v309_v31  ;;  %v329_v36 = vrot.slane %v328_v34, 1 }
  0xea   : > { %313 = vst.msk [vmem:[%s214_s30] sm:$0x1] %vm312_vm3, %v311_v35  ;;  %v330_v37 = vadd.f32 %v329_v36, %v328_v34 }
  0xec   : > { %331 = vst.msk [vmem:[%s217_s7] sm:$0x1] %vm312_vm3, %v330_v37 }
  0xed PF: > { %s15_s15 = sadd.s32 1, %s479_s15  }
  0xee   : > { %p12_p5 = scmp.ge.s32.totalorder %s15_s15, 6  }
  0xf0   :  { %14 = sbr.rel (!%p12_p5) target bundleno = 1 (0x1), region = 82 }

// kernel: resblock_forward.7
= control target key start
LH: loop header
LB: loop body
LE: loop exit
PB: predicated region body
PF: predicated region fallthrough
CT: control target
= control target key end

     0   :  { %s563_s15 = smov 0   ;;  %s618_s0 = inlined_call_operand.vmem [shape: bf16[128,72], index: 0, kind: input, shape index: {}]   ;;  %s619_s1 = inlined_call_operand.vmem [shape: bf16[72,8], index: 1, kind: input, shape index: {}]   ;;  %s620_s2 = inlined_call_operand.vmem [shape: f32[128,8], index: 2, kind: output, shape index: {0}]   ;;  %s621_s3 = inlined_call_operand.vmem [shape: f32[4,1,8], index: 3, kind: output, shape index: {1}]   ;;  %s622_s4 = inlined_call_operand.vmem [shape: f32[4,1,8], index: 4, kind: output, shape index: {2}]  }
   0x1 LB: > { %s569_s16 = sadd.s32 4294967295, %s536_s15   ;;  %p477_p0 = scmp.ge.s32.totalorder %s536_s15, 1  ;;  %s536_s15 = sphi %s563_s15, %s15_s15  }
   0x2   : > { %p168_p1 = scmp.lt.s32.totalorder %s536_s15, 5 }
   0x4   : > { %p169_p2 = pnand %p477_p0, %p168_p1 }
   0x5   : > { %s478_s21 = sshll.u32 (!%p169_p2), %s569_s16, 2  ;;  %p212_p4 = scmp.lt.s32.totalorder (!%p169_p2), %s569_s16, 3 }
   0x6   : > { %172 = sbr.rel (%p169_p2) target bundleno = 253 (0xfd), region = 28  ;;  %p201_p3 = scmp.lt.s32.totalorder (!%p169_p2), %s478_s21, 15 }
   0xb   : > { %v523_v0 = vld [vmem:[%s619_s1 + $0x20] ss:$0 sps:$4 sm:$0xff]   ;;  %vm276_vm0 = vcmask 1043456   ;;  %v524_v1 = vld [vmem:[%s619_s1 + $0x18] sm:$0xff]   ;;  %v525_v3 = vld [vmem:[%s619_s1 + $0x10] sm:$0xff]   ;;  %s624_s21 = smov (!%p201_p3, %s478_s21), 15 }
   0xc   : > { %514 = vmatprep.subr.msk.bf16.mxu0 %vm276_vm0, %v523_v0  ;;  %v278_v2 = vsel %vm276_vm0, %v523_v0, 0  ;;  %v526_v4 = vld [vmem:[%s619_s1 + $0x8] sm:$0xff]   ;;  %s479_s26 = sshll.u32 %s624_s21, 2  ;;  %vm269_vm1 = vcmask 588800   ;;  %v527_v6 = vld [vmem:[%s619_s1] sm:$0xff]   ;;  %s481_s6 = sshll.u32 %s624_s21, 3 }
   0xd   : > { %501 = vmatpush3.bf16.msra.mxu0 %v278_v2  ;;  %s204_s29 = scalar_lea.vmem %s618_s0, %s479_s26  ;;  %s210_s9 = scalar_lea.vmem %s620_s2, %s481_s6  ;;  %vm329_vm2 = vcmask 64512   ;;  %vm347_vm3 = vcmask 57344  }
   0xe   : > { %502 = vmatprep.subr.bf16.mxu0 %v524_v1  ;;  %v528_v5 = vld [vmem:[%s204_s29] sm:$0xff]   ;;  %v529_v7 = vld [vmem:[%s204_s29 + $0x8] sm:$0xff]   ;;  %s626_s16 = smov (!%p212_p4, %s569_s16), 3 }
   0xf   : > { %510 = vmatprep.mubr.msk.bf16.mxu0 %vm269_vm1, %v528_v5  ;;  %s214_s12 = scalar_lea.vmem %s621_s3, %s626_s16  ;;  %s217_s17 = scalar_lea.vmem %s622_s4, %s626_s16 }
  0x11   : > { %503 = vmatpush3.bf16.msra.mxu0 %v524_v1 }
  0x12   : > { %504 = vmatprep.subr.bf16.mxu0 %v525_v3 }
  0x15   : > { %505 = vmatpush3.bf16.msra.mxu0 %v525_v3 }
  0x16   : > { %506 = vmatprep.subr.bf16.mxu0 %v526_v4 }
  0x19   : > { %507 = vmatpush3.bf16.msra.mxu0 %v526_v4 }
  0x1a   : > { %508 = vmatprep.subr.bf16.mxu0 %v527_v6 }
  0x1d   : > { %509 = vmatpush3.bf16.msra.mxu0 %v527_v6 }
  0x20   : > { %511 = vmatmul.mubr.msk.bf16.vlgmr.msra.gmra.mxu0 %vm269_vm1, %v529_v7 }
  0xe0   : > { %v512_v8 = vpop.f32.mrf.mxu0 }
  0xe1   : > { %332 = vst.msk [vmem:[%s210_s9 + $0x10] sm:$0xff] %vm329_vm2, %v512_v8  ;;  %v351_v13 = vmul.f32 %v512_v8, %v512_v8  ;;  %v337_v18 = vsel %vm329_vm2, %v512_v8, 0.0 }
  0xe2   : > { %v314_v9 = vpop.f32.mrf.mxu0 }
  0xe3   : > { %330 = vst.msk [vmem:[%s210_s9] sm:$0xff] %vm329_vm2, %v314_v9  ;;  %v349_v11 = vmul.f32 %v314_v9, %v314_v9  ;;  %v334_v14 = vsel %vm329_vm2, %v314_v9, 0.0  ;;  %v356_v24 = vsel %vm329_vm2, %v351_v13, 0.0 }
  0xe4   : > { %v513_v10 = vpop.f32.mrf.mxu0 }
  0xe5   : > { %333 = vst.msk [vmem:[%s210_s9 + $0x18] sm:$0xff] %vm329_vm2, %v513_v10  ;;  %v353_v19 = vsel %vm329_vm2, %v349_v11, 0.0  ;;  %v352_v20 = vmul.f32 %v513_v10, %v513_v10  ;;  %v339_v25 = vsel %vm329_vm2, %v513_v10, 0.0 }
  0xe6   : > { %v317_v12 = vpop.f32.mrf.mxu0 }
  0xe7   : > { %331 = vst.msk [vmem:[%s210_s9 + $0x8] sm:$0xff] %vm329_vm2, %v317_v12  ;;  %v335_v15 = vsel %vm329_vm2, %v317_v12, 0.0  ;;  %v350_v16 = vmul.f32 %v317_v12, %v317_v12  ;;  %v358_v28 = vsel %vm329_vm2, %v352_v20, 0.0 }
  0xe8   : > { %v336_v17 = vadd.f32 %v335_v15, %v334_v14 }
  0xe9   : > { %v354_v21 = vsel %vm329_vm2, %v350_v16, 0.0 }
  0xea   : > { %v338_v22 = vadd.f32 %v337_v18, %v336_v17  ;;  %v355_v23 = vadd.f32 %v354_v21, %v353_v19 }
  0xec   : > { %v340_v26 = vadd.f32 %v339_v25, %v338_v22  ;;  %v357_v27 = vadd.f32 %v356_v24, %v355_v23 }
  0xee   : > { %v341_v29 = vrot.slane %v340_v26, 4  ;;  %v359_v30 = vadd.f32 %v358_v28, %v357_v27 }
  0xf0   : > { %v342_v31 = vadd.f32 %v341_v29, %v340_v26  ;;  %v360_v32 = vrot.slane %v359_v30, 4 }
  0xf2   : > { %v343_v33 = vrot.slane %v342_v31, 2  ;;  %v361_v34 = vadd.f32 %v360_v32, %v359_v30 }
  0xf4   : > { %v344_v35 = vadd.f32 %v343_v33, %v342_v31  ;;  %v362_v36 = vrot.slane %v361_v34, 2 }
  0xf6   : > { %v345_v37 = vrot.slane %v344_v35, 1  ;;  %v363_v38 = vadd.f32 %v362_v36, %v361_v34 }
  0xf8   : > { %v346_v39 = vadd.f32 %v345_v37, %v344_v35  ;;  %v364_v40 = vrot.slane %v363_v38, 1 }
  0xfa   : > { %348 = vst.msk [vmem:[%s214_s12] sm:$0x1] %vm347_vm3, %v346_v39  ;;  %v365_v41 = vadd.f32 %v364_v40, %v363_v38 }
  0xfc   : > { %366 = vst.msk [vmem:[%s217_s17] sm:$0x1] %vm347_vm3, %v365_v41 }
  0xfd PF: > { %s15_s15 = sadd.s32 1, %s536_s15  }
  0xfe   : > { %p12_p5 = scmp.ge.s32.totalorder %s15_s15, 6  }
 0x100   :  { %14 = sbr.rel (!%p12_p5) target bundleno = 1 (0x1), region = 82 }

// kernel: resblock_forward.9
= control target key start
LH: loop header
LB: loop body
LE: loop exit
PB: predicated region body
PF: predicated region fallthrough
CT: control target
= control target key end

     0   :  { %s124_s0 = inlined_call_operand.vmem [shape: f32[8,128], index: 0, kind: input, shape index: {}]   ;;  %s125_s1 = inlined_call_operand.vmem [shape: f32[1,128], index: 1, kind: input, shape index: {}]   ;;  %s126_s2 = inlined_call_operand.vmem [shape: f32[1,128], index: 2, kind: input, shape index: {}]   ;;  %s127_s3 = inlined_call_operand.vmem [shape: f32[8,128], index: 3, kind: input, shape index: {}]   ;;  %s128_s4 = inlined_call_operand.vmem [shape: f32[1,128], index: 4, kind: input, shape index: {}]   ;;  %s129_s5 = inlined_call_operand.vmem [shape: f32[1,128], index: 5, kind: input, shape index: {}]   ;;  %s130_s6 = inlined_call_operand.vmem [shape: f32[8,128], index: 6, kind: output, shape index: {}]  }
   0x1   :  { %v23_v0 = vld [vmem:[%s124_s0] sm:$0xff] }
   0x2   :  { %v64_v1 = vld [vmem:[%s125_s1] ss:$0 sm:$0xff] }
   0x3   :  { %v65_v2 = vld [vmem:[%s126_s2] ss:$0 sm:$0xff]  ;;  %v31_v3 = vmul.f32 %v64_v1, %v23_v0 }
   0x4   :  { %v40_v4 = vld [vmem:[%s127_s3] sm:$0xff] }
   0x5   :  { %v66_v5 = vld [vmem:[%s128_s4] ss:$0 sm:$0xff]  ;;  %v39_v8 = vadd.f32 %v65_v2, %v31_v3 }
   0x6   :  { %v67_v6 = vld [vmem:[%s129_s5] ss:$0 sm:$0xff]  ;;  %v48_v7 = vmul.f32 %v66_v5, %v40_v4 }
   0x8   :  { %v56_v9 = vadd.f32 %v67_v6, %v48_v7 }
   0xa   :  { %v57_v10 = vadd.f32 %v56_v9, %v39_v8 }
   0xc   :  { %v58_v11 = vmax.f32 %v57_v10, 0.0 }
   0xe   :  { %59 = vst [vmem:[%s130_s6] sm:$0xff] %v58_v11 }

</bundles_post_ra>
